<compile_context>
chip_gen: v7x
topology: tpu7x:2x2x1
jax: 0.10.0
libtpu: 0.0.40
codegen_flags: <defaults>
</compile_context>

<pallas_src>
import math
import jax
import jax.numpy as jnp
from jax.experimental import pallas as pl
from jax.experimental.pallas import tpu as pltpu

LN_EPS = 1e-6

_ROW_TILES = (256, 128, 64, 32, 16, 8)      # row-tile candidates (2nd-minor dim)
_LANE_TILES = (512, 256, 128)               # lane/K tile candidates (minor dim)


def _pick_tile(dim, targets):
    """Largest target that evenly divides `dim`, else the full dim (allowed)."""
    for t in targets:
        if dim % t == 0:
            return t
    return dim


def _cparams(sem):
    # 32 MiB scoped VMEM: safe on v5e/v6e (128 MiB physical) and v7x (64 MiB).
    return pltpu.CompilerParams(
        dimension_semantics=sem,
        vmem_limit_bytes=32 * 1024 * 1024,
    )


# ------------------------------ tiled matmul + bias -------------------------- #

def _matmul_bias_kernel(act):
    def kernel(x_ref, w_ref, b_ref, o_ref, acc_ref):
        @pl.when(pl.program_id(2) == 0)
        def _():
            acc_ref[...] = jnp.zeros_like(acc_ref)

        acc_ref[...] += jnp.dot(x_ref[...], w_ref[...],
                                preferred_element_type=jnp.float32)

        @pl.when(pl.program_id(2) == pl.num_programs(2) - 1)
        def _():
            y = acc_ref[...] + b_ref[...]
            if act == "gelu":
                y = jax.nn.gelu(y, approximate=False)   # matches nn.GELU()
            elif act == "relu":
                y = jnp.maximum(y, 0.0)
            o_ref[...] = y.astype(o_ref.dtype)
    return kernel


def matmul_bias(x, w, b, act=None):
    """(M, K) @ (K, N) + b, optional activation, tiled over (tm, tn, tk)."""
    M, K = x.shape
    N = w.shape[1]
    tm = _pick_tile(M, _ROW_TILES)
    tn = _pick_tile(N, (256, 128))
    tk = _pick_tile(K, _LANE_TILES)
    cost = pl.CostEstimate(
        flops=2 * M * N * K,
        transcendentals=(M * N if act == "gelu" else 0),
        bytes_accessed=4 * (M * K + K * N + M * N + N),
    )
    return pl.pallas_call(
        _matmul_bias_kernel(act),
        out_shape=jax.ShapeDtypeStruct((M, N), x.dtype),
        grid_spec=pltpu.PrefetchScalarGridSpec(
            num_scalar_prefetch=0,
            grid=(M // tm, N // tn, K // tk),
            in_specs=[
                pl.BlockSpec((tm, tk), lambda i, j, k: (i, k)),
                pl.BlockSpec((tk, tn), lambda i, j, k: (k, j)),
                pl.BlockSpec((1, tn), lambda i, j, k: (0, j)),
            ],
            out_specs=pl.BlockSpec((tm, tn), lambda i, j, k: (i, j)),
            scratch_shapes=[pltpu.VMEM((tm, tn), jnp.float32)],
        ),
        compiler_params=_cparams(("parallel", "parallel", "arbitrary")),
        cost_estimate=cost,
    )(x, w, b)


# ------------------------------ row-tiled LayerNorm -------------------------- #

def _ln_kernel(x_ref, g_ref, b_ref, o_ref):
    x = x_ref[...].astype(jnp.float32)
    mu = jnp.mean(x, axis=-1, keepdims=True)
    var = jnp.mean((x - mu) ** 2, axis=-1, keepdims=True)
    y = (x - mu) * jax.lax.rsqrt(var + LN_EPS)
    o_ref[...] = (y * g_ref[...] + b_ref[...]).astype(o_ref.dtype)


def layernorm(x2d, gamma, beta):
    """LayerNorm over last dim of a (M, C) slab (eps=1e-6), row-tiled."""
    M, C = x2d.shape
    tm = _pick_tile(M, _ROW_TILES)
    return pl.pallas_call(
        _ln_kernel,
        out_shape=jax.ShapeDtypeStruct((M, C), x2d.dtype),
        grid_spec=pltpu.PrefetchScalarGridSpec(
            num_scalar_prefetch=0,
            grid=(M // tm,),
            in_specs=[
                pl.BlockSpec((tm, C), lambda i: (i, 0)),
                pl.BlockSpec((1, C), lambda i: (0, 0)),
                pl.BlockSpec((1, C), lambda i: (0, 0)),
            ],
            out_specs=pl.BlockSpec((tm, C), lambda i: (i, 0)),
        ),
        compiler_params=_cparams(("parallel",)),
    )(x2d, gamma, beta)


# ------------------------- depthwise 7x7 conv (per image) -------------------- #

def _dwconv_kernel(H, W, KH, KW):
    def kernel(xp_ref, w_ref, b_ref, o_ref):
        acc = jnp.zeros(o_ref.shape, jnp.float32)
        for i in range(KH):                     # unrolled 7x7 taps
            for j in range(KW):
                tap = w_ref[i, j, :][None, None, None, :]
                acc = acc + xp_ref[:, i:i + H, j:j + W, :].astype(jnp.float32) * tap
        acc = acc + b_ref[...][None, None, :, :]
        o_ref[...] = acc.astype(o_ref.dtype)
    return kernel


def dwconv7(x_nhwc, w, b):
    """Depthwise 7x7 conv, stride 1, padding 3 (per-channel), NHWC, grid over N."""
    N, H, W, C = x_nhwc.shape
    # TODO(synk): halo is still materialized in HBM via jnp.pad; an in-kernel
    # halo (zero-filled VMEM scratch) would remove one HBM round trip per block.
    xp = jnp.pad(x_nhwc, ((0, 0), (3, 3), (3, 3), (0, 0)))
    return pl.pallas_call(
        _dwconv_kernel(H, W, 7, 7),
        out_shape=jax.ShapeDtypeStruct((N, H, W, C), x_nhwc.dtype),
        grid_spec=pltpu.PrefetchScalarGridSpec(
            num_scalar_prefetch=0,
            grid=(N,),
            in_specs=[
                pl.BlockSpec((1, H + 6, W + 6, C), lambda n: (n, 0, 0, 0)),
                pl.BlockSpec((7, 7, C), lambda n: (0, 0, 0)),
                pl.BlockSpec((1, C), lambda n: (0, 0)),
            ],
            out_specs=pl.BlockSpec((1, H, W, C), lambda n: (n, 0, 0, 0)),
        ),
        compiler_params=_cparams(("parallel",)),
    )(xp, w, b)


# -------------- fused LN -> pw1+GELU -> pw2 -> gamma*y + shortcut ------------- #

def _block_mlp_kernel(x_ref, s_ref, lng_ref, lnb_ref, w1_ref, b1_ref,
                      w2_ref, b2_ref, g_ref, o_ref):
    x = x_ref[...].astype(jnp.float32)
    mu = jnp.mean(x, axis=-1, keepdims=True)
    var = jnp.mean((x - mu) ** 2, axis=-1, keepdims=True)
    y = (x - mu) * jax.lax.rsqrt(var + LN_EPS)
    y = y * lng_ref[...] + lnb_ref[...]
    h = jnp.dot(y, w1_ref[...], preferred_element_type=jnp.float32) + b1_ref[...]
    h = jax.nn.gelu(h, approximate=False)                 # matches nn.GELU()
    y2 = jnp.dot(h, w2_ref[...], preferred_element_type=jnp.float32) + b2_ref[...]
    out = s_ref[...].astype(jnp.float32) + g_ref[...] * y2
    o_ref[...] = out.astype(o_ref.dtype)


def block_mlp_residual(x2d, shortcut2d, p):
    """Fused remainder of a ConvNeXt block on a (M, C) slab, row-tiled; the
    (tm, 4C) intermediate and the block weights stay resident in VMEM."""
    M, C = x2d.shape
    C4 = p["pw1_w"].shape[1]
    tm = _pick_tile(M, _ROW_TILES)
    cost = pl.CostEstimate(
        flops=4 * M * C * C4,
        transcendentals=M * C4,
        bytes_accessed=4 * (3 * M * C + 2 * C * C4 + 5 * C + C4),
    )
    return pl.pallas_call(
        _block_mlp_kernel,
        out_shape=jax.ShapeDtypeStruct((M, C), x2d.dtype),
        grid_spec=pltpu.PrefetchScalarGridSpec(
            num_scalar_prefetch=0,
            grid=(M // tm,),
            in_specs=[
                pl.BlockSpec((tm, C), lambda i: (i, 0)),   # dwconv output rows
                pl.BlockSpec((tm, C), lambda i: (i, 0)),   # shortcut rows
                pl.BlockSpec((1, C), lambda i: (0, 0)),    # LN gamma
                pl.BlockSpec((1, C), lambda i: (0, 0)),    # LN beta
                pl.BlockSpec((C, C4), lambda i: (0, 0)),   # pw1 weight
                pl.BlockSpec((1, C4), lambda i: (0, 0)),   # pw1 bias
                pl.BlockSpec((C4, C), lambda i: (0, 0)),   # pw2 weight
                pl.BlockSpec((1, C), lambda i: (0, 0)),    # pw2 bias
                pl.BlockSpec((1, C), lambda i: (0, 0)),    # layer-scale gamma
            ],
            out_specs=pl.BlockSpec((tm, C), lambda i: (i, 0)),
        ),
        compiler_params=_cparams(("parallel",)),
        cost_estimate=cost,
    )(x2d, shortcut2d, p["ln_g"], p["ln_b"], p["pw1_w"], p["pw1_b"],
      p["pw2_w"], p["pw2_b"], p["gamma"])


# --------------------- global average pool (spatial-tiled) ------------------- #

def _gap_kernel(inv_s):
    def kernel(x_ref, o_ref, acc_ref):
        @pl.when(pl.program_id(0) == 0)
        def _():
            acc_ref[...] = jnp.zeros_like(acc_ref)
        acc_ref[...] += jnp.sum(x_ref[...].astype(jnp.float32), axis=1)

        @pl.when(pl.program_id(0) == pl.num_programs(0) - 1)
        def _():
            o_ref[...] = (acc_ref[...] * inv_s).astype(o_ref.dtype)
    return kernel


def global_avg_pool(x3d):
    """(N, H*W, C) -> (N, C) mean over the spatial axis, tiled over spatial."""
    N, S, C = x3d.shape
    ts = _pick_tile(S, (512, 256, 128, 64, 32, 16, 8))
    return pl.pallas_call(
        _gap_kernel(1.0 / S),
        out_shape=jax.ShapeDtypeStruct((N, C), x3d.dtype),
        grid_spec=pltpu.PrefetchScalarGridSpec(
            num_scalar_prefetch=0,
            grid=(S // ts,),
            in_specs=[pl.BlockSpec((N, ts, C), lambda s: (0, s, 0))],
            out_specs=pl.BlockSpec((N, C), lambda s: (0, 0)),
            scratch_shapes=[pltpu.VMEM((N, C), jnp.float32)],
        ),
        compiler_params=_cparams(("arbitrary",)),
    )(x3d)


# ------------------------------ glue (plain JAX) ----------------------------- #

def patchify(x_nhwc, k):
    """Non-overlapping kxk patch extraction (conv with stride == kernel)."""
    # TODO(synk): could be folded into the matmul BlockSpec index_map to avoid
    # materializing the transposed copy in HBM.
    N, H, W, C = x_nhwc.shape
    x = x_nhwc.reshape(N, H // k, k, W // k, k, C)
    x = x.transpose(0, 1, 3, 2, 4, 5)           # N, H/k, W/k, k, k, C
    return x.reshape(N, H // k, W // k, k * k * C)


def block_forward(x, p):
    """One ConvNeXt block, NHWC in/out (dwconv kernel + one fused MLP kernel)."""
    N, H, W, C = x.shape
    shortcut = x.reshape(N * H * W, C)          # free view (row-major NHWC)
    y = dwconv7(x, p["dw_w"], p["dw_b"])
    y = y.reshape(N * H * W, C)
    y = block_mlp_residual(y, shortcut, p)
    return y.reshape(N, H, W, C)


def convnext_bottom_up_forward(x_nchw, params):
    """Reproduces ConvNeXt_Bottom_Up.forward: returns (logits, None)."""
    x = jnp.transpose(x_nchw, (0, 2, 3, 1))     # NCHW -> NHWC
    N = x.shape[0]

    # --- stem: conv 4x4 stride 4 (patchify + matmul) + LayerNorm ---
    p = patchify(x, 4)
    _, Ho, Wo, Kp = p.shape
    y = matmul_bias(p.reshape(-1, Kp), params["stem_w"], params["stem_b"])
    y = layernorm(y, params["stem_ln_g"], params["stem_ln_b"])
    x = y.reshape(N, Ho, Wo, -1)

    # --- stages ---
    for stage in range(4):
        if stage > 0:
            dp = params["downsample"][stage - 1]
            N_, H_, W_, C_ = x.shape
            y = layernorm(x.reshape(-1, C_), dp["ln_g"], dp["ln_b"])
            y = y.reshape(N_, H_, W_, C_)
            pch = patchify(y, 2)
            _, Ho, Wo, Kp = pch.shape
            y = matmul_bias(pch.reshape(-1, Kp), dp["w"], dp["b"])
            x = y.reshape(N_, Ho, Wo, -1)
        for bp in params["stages"][stage]:
            x = block_forward(x, bp)

    # --- global average pool + final LayerNorm ---
    N_, H_, W_, C_ = x.shape
    feat = global_avg_pool(x.reshape(N_, H_ * W_, C_))
    feat = layernorm(feat, params["norm_g"], params["norm_b"])

    # --- MLP head: Linear + ReLU (+ dropout=id in eval) + Linear ---
    h = matmul_bias(feat, params["head"][0]["w"], params["head"][0]["b"], act="relu")
    logits = matmul_bias(h, params["head"][1]["w"], params["head"][1]["b"])
    return logits, None


# ------------------------------ parameter init ------------------------------ #

def init_params(key, in_chans=3, dims=(8, 16, 32, 64), depths=(1, 1, 1, 1),
                num_classes=10):
    keys = iter(jax.random.split(key, 256))

    def w(shape, scale=0.02):
        return scale * jax.random.normal(next(keys), shape, jnp.float32)

    params = {}
    params["stem_w"] = w((4 * 4 * in_chans, dims[0]))
    params["stem_b"] = jnp.zeros((1, dims[0]), jnp.float32)
    params["stem_ln_g"] = jnp.ones((1, dims[0]), jnp.float32)
    params["stem_ln_b"] = jnp.zeros((1, dims[0]), jnp.float32)

    params["downsample"] = []
    for i in range(1, 4):
        params["downsample"].append(dict(
            ln_g=jnp.ones((1, dims[i - 1]), jnp.float32),
            ln_b=jnp.zeros((1, dims[i - 1]), jnp.float32),
            w=w((2 * 2 * dims[i - 1], dims[i])),
            b=jnp.zeros((1, dims[i]), jnp.float32)))

    params["stages"] = []
    for i in range(4):
        C = dims[i]
        blocks = []
        for _ in range(depths[i]):
            blocks.append(dict(
                dw_w=w((7, 7, C)),
                dw_b=jnp.zeros((1, C), jnp.float32),
                ln_g=jnp.ones((1, C), jnp.float32),
                ln_b=jnp.zeros((1, C), jnp.float32),
                pw1_w=w((C, 4 * C)),
                pw1_b=jnp.zeros((1, 4 * C), jnp.float32),
                pw2_w=w((4 * C, C)),
                pw2_b=jnp.zeros((1, C), jnp.float32),
                gamma=jnp.full((1, C), 1e-6, jnp.float32)))   # ConvNeXt layer-scale init
        params["stages"].append(blocks)

    feat = dims[-1]
    params["norm_g"] = jnp.ones((1, feat), jnp.float32)
    params["norm_b"] = jnp.zeros((1, feat), jnp.float32)

    # head = MLP([feat]*MLP_NUM + [num_classes], special_bias=True), MLP_NUM = 1
    special_bias = -math.log((1.0 - 0.01) / 0.01)
    params["head"] = [
        dict(w=w((feat, feat)), b=jnp.zeros((1, feat), jnp.float32)),
        dict(w=w((feat, num_classes)),
             b=jnp.full((1, num_classes), special_bias, jnp.float32)),
    ]
    return params


# ---------------------------------- main ------------------------------------ #

if __name__ == "__main__":
    key = jax.random.PRNGKey(0)
    pkey, xkey = jax.random.split(key)

    params = init_params(pkey)
    # small input consistent with the module's NCHW image convention
    x = jax.random.normal(xkey, (2, 3, 64, 64), jnp.float32)

    logits, aux = convnext_bottom_up_forward(x, params)
    logits = jax.block_until_ready(logits)

    assert logits.shape == (2, 10), logits.shape
    assert aux is None
    print("KERNEL_OK")
</pallas_src>

<mosaic_0001>
module attributes {stable_mosaic.version = 11 : i64} {
  func.func @kernel(%arg0: i32, %arg1: i32, %arg2: i32, %arg3: memref<256x48xf32, #tpu.memory_space<vmem>>, %arg4: memref<48x8xf32, #tpu.memory_space<vmem>>, %arg5: memref<1x8xf32, #tpu.memory_space<vmem>>, %arg6: memref<256x8xf32, #tpu.memory_space<vmem>>, %arg7: memref<256x8xf32, #tpu.memory_space<vmem>>) attributes {dimension_semantics = [#tpu.dimension_semantics<parallel>, #tpu.dimension_semantics<parallel>, #tpu.dimension_semantics<arbitrary>], iteration_bounds = array<i64: 2, 1, 1>, scalar_prefetch = 0 : i64, scratch_operands = 1 : i64, tpu.core_type = #tpu.core_type<tc>, window_params = [{transform_indices = @transform_0, window_bounds = array<i64: 256, 48>}, {transform_indices = @transform_1, window_bounds = array<i64: 48, 8>}, {transform_indices = @transform_2, window_bounds = array<i64: 1, 8>}, {transform_indices = @transform_3, window_bounds = array<i64: 256, 8>}]} {
    %c0_i32 = arith.constant 0 : i32
    %0 = arith.cmpi eq, %arg2, %c0_i32 : i32
    %1 = arith.extui %0 : i1 to i32
    %c0_i32_0 = arith.constant 0 : i32
    %2 = arith.cmpi ne, %1, %c0_i32_0 : i32
    scf.if %2 {
      %cst_10 = arith.constant 0.000000e+00 : f32
      %12 = vector.broadcast %cst_10 : f32 to vector<256x8xf32>
      %c0_11 = arith.constant 0 : index
      %c0_12 = arith.constant 0 : index
      %13 = vector.load %arg7[%c0_11, %c0_12] : memref<256x8xf32, #tpu.memory_space<vmem>>, vector<256x8xf32>
      tpu.vector_store %arg7[%c0_11, %c0_12], %12 {strides = array<i32>} : memref<256x8xf32, #tpu.memory_space<vmem>>, vector<256x8xf32>,
    } else {
    }
    %c0 = arith.constant 0 : index
    %c0_1 = arith.constant 0 : index
    %3 = vector.load %arg7[%c0, %c0_1] : memref<256x8xf32, #tpu.memory_space<vmem>>, vector<256x8xf32>
    %c0_2 = arith.constant 0 : index
    %c0_3 = arith.constant 0 : index
    %4 = vector.load %arg3[%c0_2, %c0_3] : memref<256x48xf32, #tpu.memory_space<vmem>>, vector<256x48xf32>
    %c0_4 = arith.constant 0 : index
    %c0_5 = arith.constant 0 : index
    %5 = vector.load %arg4[%c0_4, %c0_5] : memref<48x8xf32, #tpu.memory_space<vmem>>, vector<48x8xf32>
    %cst = arith.constant dense<0.000000e+00> : vector<256x8xf32>
    %6 = tpu.matmul %4, %5, %cst {dimension_numbers = #tpu.dot_dimension_numbers<[1], [0], [0], [1], [0, 0, 1, 1], [], []>} : vector<256x48xf32>, vector<48x8xf32>, vector<256x8xf32> -> vector<256x8xf32>
    %7 = arith.addf %3, %6 : vector<256x8xf32>
    %c0_6 = arith.constant 0 : index
    %c0_7 = arith.constant 0 : index
    %8 = vector.load %arg7[%c0_6, %c0_7] : memref<256x8xf32, #tpu.memory_space<vmem>>, vector<256x8xf32>
    tpu.vector_store %arg7[%c0_6, %c0_7], %7 {strides = array<i32>} : memref<256x8xf32, #tpu.memory_space<vmem>>, vector<256x8xf32>,
    %c0_i32_8 = arith.constant 0 : i32
    %9 = arith.cmpi eq, %arg2, %c0_i32_8 : i32
    %10 = arith.extui %9 : i1 to i32
    %c0_i32_9 = arith.constant 0 : i32
    %11 = arith.cmpi ne, %10, %c0_i32_9 : i32
    scf.if %11 {
      %c0_10 = arith.constant 0 : index
      %c0_11 = arith.constant 0 : index
      %12 = vector.load %arg7[%c0_10, %c0_11] : memref<256x8xf32, #tpu.memory_space<vmem>>, vector<256x8xf32>
      %c0_12 = arith.constant 0 : index
      %c0_13 = arith.constant 0 : index
      %13 = vector.load %arg5[%c0_12, %c0_13] : memref<1x8xf32, #tpu.memory_space<vmem>>, vector<1x8xf32>
      %14 = vector.broadcast %13 : vector<1x8xf32> to vector<256x8xf32>
      %15 = arith.addf %12, %14 : vector<256x8xf32>
      %c0_14 = arith.constant 0 : index
      %c0_15 = arith.constant 0 : index
      %16 = vector.load %arg6[%c0_14, %c0_15] : memref<256x8xf32, #tpu.memory_space<vmem>>, vector<256x8xf32>
      tpu.vector_store %arg6[%c0_14, %c0_15], %15 {strides = array<i32>} : memref<256x8xf32, #tpu.memory_space<vmem>>, vector<256x8xf32>,
    } else {
    }
    return
  }
  func.func @transform_0(%arg0: i32, %arg1: i32, %arg2: i32) -> (i32, i32) {
    %c0_i32 = arith.constant 0 : i32
    return %arg0, %arg2 : i32, i32
  }
  func.func @transform_1(%arg0: i32, %arg1: i32, %arg2: i32) -> (i32, i32) {
    %c0_i32 = arith.constant 0 : i32
    return %arg2, %arg1 : i32, i32
  }
  func.func @transform_2(%arg0: i32, %arg1: i32, %arg2: i32) -> (i32, i32) {
    %c0_i32 = arith.constant 0 : i32
    %c0_i32_0 = arith.constant 0 : i32
    return %c0_i32, %arg1 : i32, i32
  }
  func.func @transform_3(%arg0: i32, %arg1: i32, %arg2: i32) -> (i32, i32) {
    %c0_i32 = arith.constant 0 : i32
    return %arg0, %arg1 : i32, i32
  }
}

</mosaic_0001>

<bundles_post_ra>
// kernel: tpu_custom_call.1
= control target key start
LH: loop header
LB: loop body
LE: loop exit
PB: predicated region body
PF: predicated region fallthrough
CT: control target
= control target key end

     0   :  { %s1202_s12 = smov 0   ;;  %s1204_s13 = smov 0   ;;  %s1506_s0 = inlined_call_operand.vmem [shape: f32[512,48], index: 0, kind: input, shape index: {}]   ;;  %s1507_s1 = inlined_call_operand.vmem [shape: f32[48,8], index: 1, kind: input, shape index: {}]   ;;  %s1508_s2 = inlined_call_operand.vmem [shape: f32[1,8], index: 2, kind: input, shape index: {}]   ;;  %s1509_s3 = inlined_call_operand.vmem [shape: f32[512,8], index: 3, kind: output, shape index: {}]  }
   0x1   :  { %s1206_s14 = smov 0  }
   0x2 LB: > { %s32_s15 = sadd.s32 1, %s1175_s13  ;;  %p976_p0 = scmp.ge.s32.totalorder %s1179_s14, 1  ;;  %s1179_s14 = sphi %s1206_s14, %s13_s14   ;;  %s1175_s13 = sphi %s1204_s13, %s1512_s13   ;;  %s1171_s12 = sphi %s1202_s12, %s1511_s12  }
   0x3   : > { %p34_p1 = scmp.ge.s32.totalorder %s32_s15, 2  ;;  %p188_p2 = scmp.lt.s32.totalorder %s1179_s14, 3 }
   0x5   : > { %s1514_s15 = smov (%p34_p1, %s32_s15), 0  ;;  %p189_p3 = pnand %p976_p0, %p188_p2 }
   0x6   : > { %v360_v0 = vld [vmem:[%s1507_s1] sm:$0xff] (!%p189_p3)  ;;  %v361_v1 = vld [vmem:[%s1507_s1 + $0x8] sm:$0xff] (!%p189_p3)  ;;  %v362_v2 = vld [vmem:[%s1507_s1 + $0x10] sm:$0xff] (!%p189_p3)  ;;  %s977_s22 = sshll.u32 (!%p189_p3), %s1171_s12, 5  ;;  %vm263_vm0 = vcmask (!%p189_p3), 64512   ;;  %v1181_v8 = vmov (!%p189_p3), 0.0  }
   0x7   : > { %192 = sbr.rel (%p189_p3) target bundleno = 276 (0x114), region = 32  ;;  %v1114_v3 = vpack.c.bf16 (!%p189_p3), %v361_v1, %v360_v0  ;;  %v363_v4 = vld [vmem:[%s1507_s1 + $0x18] sm:$0xff] (!%p189_p3)  ;;  %p1237_p4 = scmp.lt.s32.totalorder (!%p189_p3), %s977_s22, 63  ;;  %v364_v6 = vld [vmem:[%s1507_s1 + $0x20] sm:$0xff] (!%p189_p3)  ;;  %v365_v7 = vld [vmem:[%s1507_s1 + $0x28] sm:$0xff] (!%p189_p3)  ;;  %265 = vst.msk [vmem:[#allocation2 + $0x8] sm:$0xff] (!%p189_p3), %vm263_vm0, %v1181_v8 }
   0x8   : > { %v1118_v5 = vpack.c.bf16 (!%p189_p3), %v363_v4, %v362_v2  ;;  %264 = vst.msk [vmem:[#allocation2] sm:$0xff] (!%p189_p3), %vm263_vm0, %v1181_v8  ;;  %266 = vst.msk [vmem:[#allocation2 + $0x10] sm:$0xff] (!%p189_p3), %vm263_vm0, %v1181_v8  ;;  %v1122_v9 = vpack.c.bf16 (!%p189_p3), %v365_v7, %v364_v6  ;;  %vm366_vm1 = vcmask (!%p189_p3), 392192   ;;  %v1366_v6 = vld [vmem:[%s1508_s2] ss:$0 sm:$0xff] (!%p189_p3) }
   0x9   : > { %267 = vst.msk [vmem:[#allocation2 + $0x18] sm:$0xff] (!%p189_p3), %vm263_vm0, %v1181_v8  ;;  %268 = vst.msk [vmem:[#allocation2 + $0x20] sm:$0xff] (!%p189_p3), %vm263_vm0, %v1181_v8  ;;  %1115 = vmatprep.subr.bf16.mxu0 (!%p189_p3), %v1114_v3  ;;  %1126 = vmatprep.subr.bf16.mxu1 (!%p189_p3), %v1114_v3 }
   0xa   : > { %269 = vst.msk [vmem:[#allocation2 + $0x28] sm:$0xff] (!%p189_p3), %vm263_vm0, %v1181_v8  ;;  %270 = vst.msk [vmem:[#allocation2 + $0x30] sm:$0xff] (!%p189_p3), %vm263_vm0, %v1181_v8  ;;  %1117 = vmatpush3.bf16.msra.mxu0 (!%p189_p3), %v1114_v3  ;;  %1129 = vmatpush3.bf16.msra.mxu1 (!%p189_p3), %v1114_v3 }
   0xb   : > { %271 = vst.msk [vmem:[#allocation2 + $0x38] sm:$0xff] (!%p189_p3), %vm263_vm0, %v1181_v8  ;;  %272 = vst.msk [vmem:[#allocation2 + $0x40] sm:$0xff] (!%p189_p3), %vm263_vm0, %v1181_v8  ;;  %1119 = vmatprep.subr.bf16.mxu0 (!%p189_p3), %v1118_v5  ;;  %1127 = vmatprep.subr.bf16.mxu1 (!%p189_p3), %v1118_v5 }
   0xc   : > { %273 = vst.msk [vmem:[#allocation2 + $0x48] sm:$0xff] (!%p189_p3), %vm263_vm0, %v1181_v8  ;;  %274 = vst.msk [vmem:[#allocation2 + $0x50] sm:$0xff] (!%p189_p3), %vm263_vm0, %v1181_v8 }
   0xd   : > { %275 = vst.msk [vmem:[#allocation2 + $0x58] sm:$0xff] (!%p189_p3), %vm263_vm0, %v1181_v8  ;;  %276 = vst.msk [vmem:[#allocation2 + $0x60] sm:$0xff] (!%p189_p3), %vm263_vm0, %v1181_v8 }
   0xe   : > { %277 = vst.msk [vmem:[#allocation2 + $0x68] sm:$0xff] %vm263_vm0, %v1181_v8  ;;  %278 = vst.msk [vmem:[#allocation2 + $0x70] sm:$0xff] %vm263_vm0, %v1181_v8  ;;  %s1516_s22 = smov (!%p1237_p4, %s977_s22), 63  ;;  %1121 = vmatpush3.bf16.msra.mxu0 %v1118_v5  ;;  %1130 = vmatpush3.bf16.msra.mxu1 %v1118_v5  ;;  %v297_v42 = vld [vmem:[#allocation2 + $0x8] sm:$0xff] }
   0xf   : > { %279 = vst.msk [vmem:[#allocation2 + $0x78] sm:$0xff] %vm263_vm0, %v1181_v8  ;;  %280 = vst.msk [vmem:[#allocation2 + $0x80] sm:$0xff] %vm263_vm0, %v1181_v8  ;;  %s978_s30 = sshll.u32 %s1516_s22, 3  ;;  %1123 = vmatprep.subr.bf16.mxu0 %v1122_v9  ;;  %1128 = vmatprep.subr.bf16.mxu1 %v1122_v9  ;;  %v296_v44 = vld [vmem:[#allocation2] sm:$0xff]  ;;  %v298_v56 = vld [vmem:[#allocation2 + $0x10] sm:$0xff] }
  0x10   : > { %281 = vst.msk [vmem:[#allocation2 + $0x88] sm:$0xff] %vm263_vm0, %v1181_v8  ;;  %282 = vst.msk [vmem:[#allocation2 + $0x90] sm:$0xff] %vm263_vm0, %v1181_v8  ;;  %s1291_s6 = scalar_lea.vmem %s1506_s0, %s978_s30  ;;  %v299_v54 = vld [vmem:[#allocation2 + $0x18] sm:$0xff]  ;;  %v300_v4 = vld [vmem:[#allocation2 + $0x20] sm:$0xff]  ;;  %s1375_s11 = scalar_lea.vmem %s1509_s3, %s978_s30 }
  0x11   : > { %283 = vst.msk [vmem:[#allocation2 + $0x98] sm:$0xff] %vm263_vm0, %v1181_v8  ;;  %284 = vst.msk [vmem:[#allocation2 + $0xa0] sm:$0xff] %vm263_vm0, %v1181_v8  ;;  %v328_v10 = vld [vmem:[%s1291_s6] sm:$0xff]  ;;  %v329_v12 = vld [vmem:[%s1291_s6 + $0x8] sm:$0xff] }
  0x12   : > { %285 = vst.msk [vmem:[#allocation2 + $0xa8] sm:$0xff] %vm263_vm0, %v1181_v8  ;;  %286 = vst.msk [vmem:[#allocation2 + $0xb0] sm:$0xff] %vm263_vm0, %v1181_v8  ;;  %v344_v11 = vld [vmem:[%s1291_s6 + $0x80] sm:$0xff]  ;;  %1066 = vmatprep.mubr.msk.f32.mxu0 %vm366_vm1, %v328_v10  ;;  %1125 = vmatpush3.bf16.msra.mxu0 %v1122_v9  ;;  %v345_v13 = vld [vmem:[%s1291_s6 + $0x88] sm:$0xff] }
  0x13   : > { %287 = vst.msk [vmem:[#allocation2 + $0xb8] sm:$0xff] %vm263_vm0, %v1181_v8  ;;  %288 = vst.msk [vmem:[#allocation2 + $0xc0] sm:$0xff] %vm263_vm0, %v1181_v8  ;;  %1090 = vmatprep.mubr.msk.f32.mxu1 %vm366_vm1, %v344_v11  ;;  %1131 = vmatpush3.bf16.msra.mxu1 %v1122_v9  ;;  %v330_v14 = vld [vmem:[%s1291_s6 + $0x10] sm:$0xff]  ;;  %v331_v16 = vld [vmem:[%s1291_s6 + $0x18] sm:$0xff] }
  0x14   : > { %289 = vst.msk [vmem:[#allocation2 + $0xc8] sm:$0xff] %vm263_vm0, %v1181_v8  ;;  %290 = vst.msk [vmem:[#allocation2 + $0xd0] sm:$0xff] %vm263_vm0, %v1181_v8  ;;  %v346_v15 = vld [vmem:[%s1291_s6 + $0x90] sm:$0xff]  ;;  %v347_v17 = vld [vmem:[%s1291_s6 + $0x98] sm:$0xff] }
  0x15   : > { %291 = vst.msk [vmem:[#allocation2 + $0xd8] sm:$0xff] %vm263_vm0, %v1181_v8  ;;  %292 = vst.msk [vmem:[#allocation2 + $0xe0] sm:$0xff] %vm263_vm0, %v1181_v8  ;;  %1067 = vmatmul.mubr.msk.f32.vlgmr.msra.gmra.mrb[0].mxu0 %vm366_vm1, %v329_v12  ;;  %v332_v18 = vld [vmem:[%s1291_s6 + $0x20] sm:$0xff]  ;;  %v333_v20 = vld [vmem:[%s1291_s6 + $0x28] sm:$0xff] }
  0x16   : > { %293 = vst.msk [vmem:[#allocation2 + $0xe8] sm:$0xff] %vm263_vm0, %v1181_v8  ;;  %294 = vst.msk [vmem:[#allocation2 + $0xf0] sm:$0xff] %vm263_vm0, %v1181_v8  ;;  %1091 = vmatmul.mubr.msk.f32.vlgmr.msra.gmra.mrb[0].mxu1 %vm366_vm1, %v345_v13  ;;  %1069 = vmatprep.mubr.msk.f32.mxu0 %vm366_vm1, %v330_v14  ;;  %v348_v19 = vld [vmem:[%s1291_s6 + $0xa0] sm:$0xff]  ;;  %v349_v21 = vld [vmem:[%s1291_s6 + $0xa8] sm:$0xff] }
  0x17   : > { %295 = vst.msk [vmem:[#allocation2 + $0xf8] sm:$0xff] %vm263_vm0, %v1181_v8  ;;  %1093 = vmatprep.mubr.msk.f32.mxu1 %vm366_vm1, %v346_v15  ;;  %v334_v22 = vld [vmem:[%s1291_s6 + $0x30] sm:$0xff]  ;;  %v335_v24 = vld [vmem:[%s1291_s6 + $0x38] sm:$0xff]  ;;  %v336_v26 = vld [vmem:[%s1291_s6 + $0x40] sm:$0xff] }
  0x18   : > { %v350_v23 = vld [vmem:[%s1291_s6 + $0xb0] sm:$0xff]  ;;  %v351_v25 = vld [vmem:[%s1291_s6 + $0xb8] sm:$0xff]  ;;  %v352_v27 = vld [vmem:[%s1291_s6 + $0xc0] sm:$0xff] }
  0x19   : > { %1070 = vmatmul.mubr.msk.f32.gmra.mrb[2].mxu0 %vm366_vm1, %v331_v16  ;;  %v337_v28 = vld [vmem:[%s1291_s6 + $0x48] sm:$0xff]  ;;  %v338_v30 = vld [vmem:[%s1291_s6 + $0x50] sm:$0xff]  ;;  %v339_v32 = vld [vmem:[%s1291_s6 + $0x58] sm:$0xff] }
  0x1a   : > { %1094 = vmatmul.mubr.msk.f32.gmra.mrb[2].mxu1 %vm366_vm1, %v347_v17  ;;  %1072 = vmatprep.mubr.msk.f32.mxu0 %vm366_vm1, %v332_v18  ;;  %v353_v29 = vld [vmem:[%s1291_s6 + $0xc8] sm:$0xff]  ;;  %v354_v31 = vld [vmem:[%s1291_s6 + $0xd0] sm:$0xff]  ;;  %v355_v33 = vld [vmem:[%s1291_s6 + $0xd8] sm:$0xff] }
  0x1b   : > { %1096 = vmatprep.mubr.msk.f32.mxu1 %vm366_vm1, %v348_v19  ;;  %v340_v34 = vld [vmem:[%s1291_s6 + $0x60] sm:$0xff]  ;;  %v341_v36 = vld [vmem:[%s1291_s6 + $0x68] sm:$0xff]  ;;  %v342_v38 = vld [vmem:[%s1291_s6 + $0x70] sm:$0xff] }
  0x1c   : > { %v356_v35 = vld [vmem:[%s1291_s6 + $0xe0] sm:$0xff]  ;;  %v357_v37 = vld [vmem:[%s1291_s6 + $0xe8] sm:$0xff]  ;;  %v358_v39 = vld [vmem:[%s1291_s6 + $0xf0] sm:$0xff] }
  0x1d   : > { %1073 = vmatmul.mubr.msk.f32.gmra.mrb[4].mxu0 %vm366_vm1, %v333_v20  ;;  %v343_v40 = vld [vmem:[%s1291_s6 + $0x78] sm:$0xff]  ;;  %v313_v43 = vld [vmem:[#allocation2 + $0x88] sm:$0xff]  ;;  %v312_v45 = vld [vmem:[#allocation2 + $0x80] sm:$0xff] }
  0x1e   : > { %1097 = vmatmul.mubr.msk.f32.gmra.mrb[4].mxu1 %vm366_vm1, %v349_v21  ;;  %1075 = vmatprep.mubr.msk.f32.mxu0 %vm366_vm1, %v334_v22  ;;  %v359_v41 = vld [vmem:[%s1291_s6 + $0xf8] sm:$0xff]  ;;  %v314_v57 = vld [vmem:[#allocation2 + $0x90] sm:$0xff]  ;;  %v301_v2 = vld [vmem:[#allocation2 + $0x28] sm:$0xff] }
  0x1f   : > { %1099 = vmatprep.mubr.msk.f32.mxu1 %vm366_vm1, %v350_v23  ;;  %v315_v55 = vld [vmem:[#allocation2 + $0x98] sm:$0xff]  ;;  %v317_v3 = vld [vmem:[#allocation2 + $0xa8] sm:$0xff]  ;;  %v316_v5 = vld [vmem:[#allocation2 + $0xa0] sm:$0xff] }
  0x20   : > { %v303_v13 = vld [vmem:[#allocation2 + $0x38] sm:$0xff]  ;;  %v302_v19 = vld [vmem:[#allocation2 + $0x30] sm:$0xff] }
  0x21   : > { %1076 = vmatmul.mubr.msk.f32.gmra.mrb[6].mxu0 %vm366_vm1, %v335_v24  ;;  %v319_v14 = vld [vmem:[#allocation2 + $0xb8] sm:$0xff]  ;;  %v318_v24 = vld [vmem:[#allocation2 + $0xb0] sm:$0xff] }
  0x22   : > { %1100 = vmatmul.mubr.msk.f32.gmra.mrb[6].mxu1 %vm366_vm1, %v351_v25  ;;  %1078 = vmatprep.mubr.msk.f32.mxu0 %vm366_vm1, %v336_v26 }
  0x23   : > { %1102 = vmatprep.mubr.msk.f32.mxu1 %vm366_vm1, %v352_v27 }
  0x25   : > { %1079 = vmatmul.mubr.msk.f32.gmra.mrb[8].mxu0 %vm366_vm1, %v337_v28 }
  0x26   : > { %1103 = vmatmul.mubr.msk.f32.gmra.mrb[8].mxu1 %vm366_vm1, %v353_v29  ;;  %1081 = vmatprep.mubr.msk.f32.mxu0 %vm366_vm1, %v338_v30 }
  0x27   : > { %1105 = vmatprep.mubr.msk.f32.mxu1 %vm366_vm1, %v354_v31 }
  0x29   : > { %1082 = vmatmul.mubr.msk.f32.gmra.mrb[10].mxu0 %vm366_vm1, %v339_v32 }
  0x2a   : > { %1106 = vmatmul.mubr.msk.f32.gmra.mrb[10].mxu1 %vm366_vm1, %v355_v33  ;;  %1084 = vmatprep.mubr.msk.f32.mxu0 %vm366_vm1, %v340_v34  ;;  %v305_v33 = vld [vmem:[#allocation2 + $0x48] sm:$0xff] }
  0x2b   : > { %1108 = vmatprep.mubr.msk.f32.mxu1 %vm366_vm1, %v356_v35  ;;  %v321_v34 = vld [vmem:[#allocation2 + $0xc8] sm:$0xff] }
  0x2d   : > { %1085 = vmatmul.mubr.msk.f32.gmra.mrb[12].mxu0 %vm366_vm1, %v341_v36 }
  0x2e   : > { %1109 = vmatmul.mubr.msk.f32.gmra.mrb[12].mxu1 %vm366_vm1, %v357_v37  ;;  %1087 = vmatprep.mubr.msk.f32.mxu0 %vm366_vm1, %v342_v38 }
  0x2f   : > { %1111 = vmatprep.mubr.msk.f32.mxu1 %vm366_vm1, %v358_v39  ;;  %v304_v39 = vld [vmem:[#allocation2 + $0x40] sm:$0xff] }
  0x31   : > { %1088 = vmatmul.mubr.msk.f32.gmra.mrb[14].mxu0 %vm366_vm1, %v343_v40 }
  0x32   : > { %1112 = vmatmul.mubr.msk.f32.gmra.mrb[14].mxu1 %vm366_vm1, %v359_v41 }
  0xe8   : > { %v1068_v46 = vpop.f32.mrb[0].mxu0 }
  0xe9   : > { %v1092_v47 = vpop.f32.mrb[0].mxu1  ;;  %v689_v48 = vadd.f32 %v1068_v46, %v297_v42  ;;  %v529_v50 = vpop.f32.mrb[1].mxu0 }
  0xea   : > { %v705_v49 = vadd.f32 %v1092_v47, %v313_v43  ;;  %v609_v51 = vpop.f32.mrb[1].mxu1  ;;  %v688_v52 = vadd.f32 %v529_v50, %v296_v44  ;;  %v320_v44 = vld [vmem:[#allocation2 + $0xc0] sm:$0xff] }
  0xeb   : > { %v704_v53 = vadd.f32 %v609_v51, %v312_v45  ;;  %722 = vst.msk [vmem:[#allocation2 + $0x8] sm:$0xff] %vm263_vm0, %v689_v48 }
  0xec   : > { %738 = vst.msk [vmem:[#allocation2 + $0x88] sm:$0xff] %vm263_vm0, %v705_v49  ;;  %721 = vst.msk [vmem:[#allocation2] sm:$0xff] %vm263_vm0, %v688_v52  ;;  %v1071_v58 = vpop.f32.mrb[2].mxu0 }
  0xed   : > { %737 = vst.msk [vmem:[#allocation2 + $0x80] sm:$0xff] %vm263_vm0, %v704_v53  ;;  %v1095_v59 = vpop.f32.mrb[2].mxu1  ;;  %v691_v60 = vadd.f32 %v1071_v58, %v299_v54  ;;  %v539_v62 = vpop.f32.mrb[3].mxu0  ;;  %v307_v53 = vld [vmem:[#allocation2 + $0x58] sm:$0xff] }
  0xee   : > { %v707_v61 = vadd.f32 %v1095_v59, %v315_v55  ;;  %v619_v63 = vpop.f32.mrb[3].mxu1  ;;  %v690_v0 = vadd.f32 %v539_v62, %v298_v56  ;;  %v323_v54 = vld [vmem:[#allocation2 + $0xd8] sm:$0xff]  ;;  %v306_v59 = vld [vmem:[#allocation2 + $0x50] sm:$0xff] }
  0xef   : > { %v706_v1 = vadd.f32 %v619_v63, %v314_v57  ;;  %724 = vst.msk [vmem:[#allocation2 + $0x18] sm:$0xff] %vm263_vm0, %v691_v60 }
  0xf0   : > { %740 = vst.msk [vmem:[#allocation2 + $0x98] sm:$0xff] %vm263_vm0, %v707_v61  ;;  %723 = vst.msk [vmem:[#allocation2 + $0x10] sm:$0xff] %vm263_vm0, %v690_v0  ;;  %v1074_v7 = vpop.f32.mrb[4].mxu0  ;;  %v322_v0 = vld [vmem:[#allocation2 + $0xd0] sm:$0xff] }
  0xf1   : > { %739 = vst.msk [vmem:[#allocation2 + $0x90] sm:$0xff] %vm263_vm0, %v706_v1  ;;  %v1098_v8 = vpop.f32.mrb[4].mxu1  ;;  %v693_v9 = vadd.f32 %v1074_v7, %v301_v2  ;;  %v549_v11 = vpop.f32.mrb[5].mxu0 }
  0xf2   : > { %v709_v10 = vadd.f32 %v1098_v8, %v317_v3  ;;  %v629_v12 = vpop.f32.mrb[5].mxu1  ;;  %v757_v15 = vld [vmem:[#allocation2 + $0x8] sm:$0xff]  ;;  %v692_v17 = vadd.f32 %v549_v11, %v300_v4 }
  0xf3   : > { %v773_v16 = vld [vmem:[#allocation2 + $0x88] sm:$0xff]  ;;  %v708_v18 = vadd.f32 %v629_v12, %v316_v5  ;;  %v796_v20 = vadd.f32 %v1366_v6, %v757_v15  ;;  %v756_v22 = vld [vmem:[#allocation2] sm:$0xff]  ;;  %726 = vst.msk [vmem:[#allocation2 + $0x28] sm:$0xff] %vm263_vm0, %v693_v9 }
  0xf4   : > { %v812_v21 = vadd.f32 %v1366_v6, %v773_v16  ;;  %v772_v23 = vld [vmem:[#allocation2 + $0x80] sm:$0xff]  ;;  %742 = vst.msk [vmem:[#allocation2 + $0xa8] sm:$0xff] %vm263_vm0, %v709_v10  ;;  %v795_v25 = vadd.f32 %v1366_v6, %v756_v22  ;;  %725 = vst.msk [vmem:[#allocation2 + $0x20] sm:$0xff] %vm263_vm0, %v692_v17  ;;  %v1077_v27 = vpop.f32.mrb[6].mxu0  ;;  %v309_v10 = vld [vmem:[#allocation2 + $0x68] sm:$0xff] }
  0xf5   : > { %v811_v26 = vadd.f32 %v1366_v6, %v772_v23  ;;  %741 = vst.msk [vmem:[#allocation2 + $0xa0] sm:$0xff] %vm263_vm0, %v708_v18  ;;  %v1101_v28 = vpop.f32.mrb[6].mxu1  ;;  %828 = vst.msk [vmem:[%s1375_s11 + $0x8] sm:$0xff] %vm263_vm0, %v796_v20  ;;  %v695_v29 = vadd.f32 %v1077_v27, %v303_v13  ;;  %v559_v31 = vpop.f32.mrb[7].mxu0  ;;  %v325_v11 = vld [vmem:[#allocation2 + $0xe8] sm:$0xff]  ;;  %v308_v16 = vld [vmem:[#allocation2 + $0x60] sm:$0xff] }
  0xf6   : > { %844 = vst.msk [vmem:[%s1375_s11 + $0x88] sm:$0xff] %vm263_vm0, %v812_v21  ;;  %v711_v30 = vadd.f32 %v1101_v28, %v319_v14  ;;  %v639_v32 = vpop.f32.mrb[7].mxu1  ;;  %827 = vst.msk [vmem:[%s1375_s11] sm:$0xff] %vm263_vm0, %v795_v25  ;;  %v759_v35 = vld [vmem:[#allocation2 + $0x18] sm:$0xff]  ;;  %v694_v37 = vadd.f32 %v559_v31, %v302_v19  ;;  %v324_v21 = vld [vmem:[#allocation2 + $0xe0] sm:$0xff] }
  0xf7   : > { %843 = vst.msk [vmem:[%s1375_s11 + $0x80] sm:$0xff] %vm263_vm0, %v811_v26  ;;  %v775_v36 = vld [vmem:[#allocation2 + $0x98] sm:$0xff]  ;;  %v710_v38 = vadd.f32 %v639_v32, %v318_v24  ;;  %v798_v40 = vadd.f32 %v1366_v6, %v759_v35  ;;  %v758_v42 = vld [vmem:[#allocation2 + $0x10] sm:$0xff]  ;;  %728 = vst.msk [vmem:[#allocation2 + $0x38] sm:$0xff] %vm263_vm0, %v695_v29 }
  0xf8   : > { %v814_v41 = vadd.f32 %v1366_v6, %v775_v36  ;;  %v774_v43 = vld [vmem:[#allocation2 + $0x90] sm:$0xff]  ;;  %744 = vst.msk [vmem:[#allocation2 + $0xb8] sm:$0xff] %vm263_vm0, %v711_v30  ;;  %v797_v45 = vadd.f32 %v1366_v6, %v758_v42  ;;  %727 = vst.msk [vmem:[#allocation2 + $0x30] sm:$0xff] %vm263_vm0, %v694_v37  ;;  %v1080_v47 = vpop.f32.mrb[8].mxu0  ;;  %v311_v30 = vld [vmem:[#allocation2 + $0x78] sm:$0xff] }
  0xf9   : > { %v813_v46 = vadd.f32 %v1366_v6, %v774_v43  ;;  %743 = vst.msk [vmem:[#allocation2 + $0xb0] sm:$0xff] %vm263_vm0, %v710_v38  ;;  %v1104_v48 = vpop.f32.mrb[8].mxu1  ;;  %830 = vst.msk [vmem:[%s1375_s11 + $0x18] sm:$0xff] %vm263_vm0, %v798_v40  ;;  %v697_v49 = vadd.f32 %v1080_v47, %v305_v33  ;;  %v569_v51 = vpop.f32.mrb[9].mxu0  ;;  %v327_v31 = vld [vmem:[#allocation2 + $0xf8] sm:$0xff]  ;;  %v310_v36 = vld [vmem:[#allocation2 + $0x70] sm:$0xff] }
  0xfa   : > { %846 = vst.msk [vmem:[%s1375_s11 + $0x98] sm:$0xff] %vm263_vm0, %v814_v41  ;;  %v713_v50 = vadd.f32 %v1104_v48, %v321_v34  ;;  %v649_v52 = vpop.f32.mrb[9].mxu1  ;;  %829 = vst.msk [vmem:[%s1375_s11 + $0x10] sm:$0xff] %vm263_vm0, %v797_v45  ;;  %v761_v55 = vld [vmem:[#allocation2 + $0x28] sm:$0xff]  ;;  %v696_v57 = vadd.f32 %v569_v51, %v304_v39  ;;  %v326_v41 = vld [vmem:[#allocation2 + $0xf0] sm:$0xff] }
  0xfb   : > { %845 = vst.msk [vmem:[%s1375_s11 + $0x90] sm:$0xff] %vm263_vm0, %v813_v46  ;;  %v777_v56 = vld [vmem:[#allocation2 + $0xa8] sm:$0xff]  ;;  %v712_v58 = vadd.f32 %v649_v52, %v320_v44  ;;  %v800_v60 = vadd.f32 %v1366_v6, %v761_v55  ;;  %v760_v62 = vld [vmem:[#allocation2 + $0x20] sm:$0xff]  ;;  %730 = vst.msk [vmem:[#allocation2 + $0x48] sm:$0xff] %vm263_vm0, %v697_v49 }
  0xfc   : > { %v816_v61 = vadd.f32 %v1366_v6, %v777_v56  ;;  %v776_v63 = vld [vmem:[#allocation2 + $0xa0] sm:$0xff]  ;;  %746 = vst.msk [vmem:[#allocation2 + $0xc8] sm:$0xff] %vm263_vm0, %v713_v50  ;;  %v799_v1 = vadd.f32 %v1366_v6, %v760_v62  ;;  %729 = vst.msk [vmem:[#allocation2 + $0x40] sm:$0xff] %vm263_vm0, %v696_v57  ;;  %v1083_v3 = vpop.f32.mrb[10].mxu0 }
  0xfd   : > { %v815_v2 = vadd.f32 %v1366_v6, %v776_v63  ;;  %745 = vst.msk [vmem:[#allocation2 + $0xc0] sm:$0xff] %vm263_vm0, %v712_v58  ;;  %v1107_v4 = vpop.f32.mrb[10].mxu1  ;;  %832 = vst.msk [vmem:[%s1375_s11 + $0x28] sm:$0xff] %vm263_vm0, %v800_v60  ;;  %v699_v5 = vadd.f32 %v1083_v3, %v307_v53  ;;  %v579_v8 = vpop.f32.mrb[11].mxu0 }
  0xfe   : > { %848 = vst.msk [vmem:[%s1375_s11 + $0xa8] sm:$0xff] %vm263_vm0, %v816_v61  ;;  %v715_v7 = vadd.f32 %v1107_v4, %v323_v54  ;;  %v659_v9 = vpop.f32.mrb[11].mxu1  ;;  %831 = vst.msk [vmem:[%s1375_s11 + $0x20] sm:$0xff] %vm263_vm0, %v799_v1  ;;  %v763_v12 = vld [vmem:[#allocation2 + $0x38] sm:$0xff]  ;;  %v698_v14 = vadd.f32 %v579_v8, %v306_v59 }
  0xff   : > { %847 = vst.msk [vmem:[%s1375_s11 + $0xa0] sm:$0xff] %vm263_vm0, %v815_v2  ;;  %v779_v13 = vld [vmem:[#allocation2 + $0xb8] sm:$0xff]  ;;  %v714_v15 = vadd.f32 %v659_v9, %v322_v0  ;;  %v802_v17 = vadd.f32 %v1366_v6, %v763_v12  ;;  %v762_v19 = vld [vmem:[#allocation2 + $0x30] sm:$0xff]  ;;  %732 = vst.msk [vmem:[#allocation2 + $0x58] sm:$0xff] %vm263_vm0, %v699_v5 }
 0x100   : > { %v818_v18 = vadd.f32 %v1366_v6, %v779_v13  ;;  %v778_v20 = vld [vmem:[#allocation2 + $0xb0] sm:$0xff]  ;;  %748 = vst.msk [vmem:[#allocation2 + $0xd8] sm:$0xff] %vm263_vm0, %v715_v7  ;;  %v801_v22 = vadd.f32 %v1366_v6, %v762_v19  ;;  %731 = vst.msk [vmem:[#allocation2 + $0x50] sm:$0xff] %vm263_vm0, %v698_v14  ;;  %v1086_v24 = vpop.f32.mrb[12].mxu0 }
 0x101   : > { %v817_v23 = vadd.f32 %v1366_v6, %v778_v20  ;;  %747 = vst.msk [vmem:[#allocation2 + $0xd0] sm:$0xff] %vm263_vm0, %v714_v15  ;;  %v1110_v25 = vpop.f32.mrb[12].mxu1  ;;  %834 = vst.msk [vmem:[%s1375_s11 + $0x38] sm:$0xff] %vm263_vm0, %v802_v17  ;;  %v701_v26 = vadd.f32 %v1086_v24, %v309_v10  ;;  %v589_v28 = vpop.f32.mrb[13].mxu0 }
 0x102   : > { %850 = vst.msk [vmem:[%s1375_s11 + $0xb8] sm:$0xff] %vm263_vm0, %v818_v18  ;;  %v717_v27 = vadd.f32 %v1110_v25, %v325_v11  ;;  %v669_v29 = vpop.f32.mrb[13].mxu1  ;;  %833 = vst.msk [vmem:[%s1375_s11 + $0x30] sm:$0xff] %vm263_vm0, %v801_v22  ;;  %v765_v32 = vld [vmem:[#allocation2 + $0x48] sm:$0xff]  ;;  %v700_v34 = vadd.f32 %v589_v28, %v308_v16 }
 0x103   : > { %849 = vst.msk [vmem:[%s1375_s11 + $0xb0] sm:$0xff] %vm263_vm0, %v817_v23  ;;  %v781_v33 = vld [vmem:[#allocation2 + $0xc8] sm:$0xff]  ;;  %v716_v35 = vadd.f32 %v669_v29, %v324_v21  ;;  %v804_v37 = vadd.f32 %v1366_v6, %v765_v32  ;;  %v764_v39 = vld [vmem:[#allocation2 + $0x40] sm:$0xff]  ;;  %734 = vst.msk [vmem:[#allocation2 + $0x68] sm:$0xff] %vm263_vm0, %v701_v26 }
 0x104   : > { %v820_v38 = vadd.f32 %v1366_v6, %v781_v33  ;;  %v780_v40 = vld [vmem:[#allocation2 + $0xc0] sm:$0xff]  ;;  %750 = vst.msk [vmem:[#allocation2 + $0xe8] sm:$0xff] %vm263_vm0, %v717_v27  ;;  %v803_v42 = vadd.f32 %v1366_v6, %v764_v39  ;;  %733 = vst.msk [vmem:[#allocation2 + $0x60] sm:$0xff] %vm263_vm0, %v700_v34  ;;  %v1089_v44 = vpop.f32.mrb[14].mxu0 }
 0x105   : > { %v819_v43 = vadd.f32 %v1366_v6, %v780_v40  ;;  %749 = vst.msk [vmem:[#allocation2 + $0xe0] sm:$0xff] %vm263_vm0, %v716_v35  ;;  %v1113_v45 = vpop.f32.mrb[14].mxu1  ;;  %836 = vst.msk [vmem:[%s1375_s11 + $0x48] sm:$0xff] %vm263_vm0, %v804_v37  ;;  %v703_v46 = vadd.f32 %v1089_v44, %v311_v30  ;;  %v599_v48 = vpop.f32.mrb[15].mxu0 }
 0x106   : > { %852 = vst.msk [vmem:[%s1375_s11 + $0xc8] sm:$0xff] %vm263_vm0, %v820_v38  ;;  %v719_v47 = vadd.f32 %v1113_v45, %v327_v31  ;;  %v679_v49 = vpop.f32.mrb[15].mxu1  ;;  %835 = vst.msk [vmem:[%s1375_s11 + $0x40] sm:$0xff] %vm263_vm0, %v803_v42  ;;  %v767_v50 = vld [vmem:[#allocation2 + $0x58] sm:$0xff]  ;;  %v702_v52 = vadd.f32 %v599_v48, %v310_v36 }
 0x107   : > { %851 = vst.msk [vmem:[%s1375_s11 + $0xc0] sm:$0xff] %vm263_vm0, %v819_v43  ;;  %v783_v51 = vld [vmem:[#allocation2 + $0xd8] sm:$0xff]  ;;  %v718_v53 = vadd.f32 %v679_v49, %v326_v41  ;;  %v806_v54 = vadd.f32 %v1366_v6, %v767_v50  ;;  %v766_v56 = vld [vmem:[#allocation2 + $0x50] sm:$0xff]  ;;  %736 = vst.msk [vmem:[#allocation2 + $0x78] sm:$0xff] %vm263_vm0, %v703_v46 }
 0x108   : > { %v822_v55 = vadd.f32 %v1366_v6, %v783_v51  ;;  %v782_v57 = vld [vmem:[#allocation2 + $0xd0] sm:$0xff]  ;;  %752 = vst.msk [vmem:[#allocation2 + $0xf8] sm:$0xff] %vm263_vm0, %v719_v47  ;;  %v805_v58 = vadd.f32 %v1366_v6, %v766_v56  ;;  %735 = vst.msk [vmem:[#allocation2 + $0x70] sm:$0xff] %vm263_vm0, %v702_v52 }
 0x109   : > { %v821_v59 = vadd.f32 %v1366_v6, %v782_v57  ;;  %751 = vst.msk [vmem:[#allocation2 + $0xf0] sm:$0xff] %vm263_vm0, %v718_v53  ;;  %838 = vst.msk [vmem:[%s1375_s11 + $0x58] sm:$0xff] %vm263_vm0, %v806_v54 }
 0x10a   : > { %854 = vst.msk [vmem:[%s1375_s11 + $0xd8] sm:$0xff] %vm263_vm0, %v822_v55  ;;  %837 = vst.msk [vmem:[%s1375_s11 + $0x50] sm:$0xff] %vm263_vm0, %v805_v58  ;;  %v769_v60 = vld [vmem:[#allocation2 + $0x68] sm:$0xff] }
 0x10b   : > { %853 = vst.msk [vmem:[%s1375_s11 + $0xd0] sm:$0xff] %vm263_vm0, %v821_v59  ;;  %v785_v61 = vld [vmem:[#allocation2 + $0xe8] sm:$0xff]  ;;  %v808_v62 = vadd.f32 %v1366_v6, %v769_v60  ;;  %v768_v0 = vld [vmem:[#allocation2 + $0x60] sm:$0xff] }
 0x10c   : > { %v824_v63 = vadd.f32 %v1366_v6, %v785_v61  ;;  %v784_v1 = vld [vmem:[#allocation2 + $0xe0] sm:$0xff]  ;;  %v807_v2 = vadd.f32 %v1366_v6, %v768_v0 }
 0x10d   : > { %v823_v3 = vadd.f32 %v1366_v6, %v784_v1  ;;  %840 = vst.msk [vmem:[%s1375_s11 + $0x68] sm:$0xff] %vm263_vm0, %v808_v62 }
 0x10e   : > { %856 = vst.msk [vmem:[%s1375_s11 + $0xe8] sm:$0xff] %vm263_vm0, %v824_v63  ;;  %839 = vst.msk [vmem:[%s1375_s11 + $0x60] sm:$0xff] %vm263_vm0, %v807_v2  ;;  %v771_v4 = vld [vmem:[#allocation2 + $0x78] sm:$0xff] }
 0x10f   : > { %855 = vst.msk [vmem:[%s1375_s11 + $0xe0] sm:$0xff] %vm263_vm0, %v823_v3  ;;  %v787_v5 = vld [vmem:[#allocation2 + $0xf8] sm:$0xff]  ;;  %v810_v7 = vadd.f32 %v1366_v6, %v771_v4  ;;  %v770_v9 = vld [vmem:[#allocation2 + $0x70] sm:$0xff] }
 0x110   : > { %v826_v8 = vadd.f32 %v1366_v6, %v787_v5  ;;  %v786_v10 = vld [vmem:[#allocation2 + $0xf0] sm:$0xff]  ;;  %v809_v11 = vadd.f32 %v1366_v6, %v770_v9 }
 0x111   : > { %v825_v12 = vadd.f32 %v1366_v6, %v786_v10  ;;  %842 = vst.msk [vmem:[%s1375_s11 + $0x78] sm:$0xff] %vm263_vm0, %v810_v7 }
 0x112   : > { %858 = vst.msk [vmem:[%s1375_s11 + $0xf8] sm:$0xff] %vm263_vm0, %v826_v8  ;;  %841 = vst.msk [vmem:[%s1375_s11 + $0x70] sm:$0xff] %vm263_vm0, %v809_v11 }
 0x113   : > { %857 = vst.msk [vmem:[%s1375_s11 + $0xf0] sm:$0xff] %vm263_vm0, %v825_v12 }
 0x114 PF: > { %s13_s14 = sadd.s32 1, %s1179_s14   ;;  %s1511_s12 = smov %s1175_s13 }
 0x115   : > { %p10_p5 = scmp.ge.s32.totalorder %s13_s14, 4   ;;  %s1512_s13 = smov %s1514_s15 }
 0x117   :  { %12 = sbr.rel (!%p10_p5) target bundleno = 2 (0x2), region = 76 }

</bundles_post_ra>
